<compile_context>
chip_gen: v7x
topology: tpu7x:2x2x1
jax: 0.10.0
libtpu: 0.0.40
codegen_flags: <defaults>
</compile_context>

<pallas_src>
import numpy as np
import jax
import jax.numpy as jnp
from jax.experimental import pallas as pl
from jax.experimental.pallas import tpu as pltpu

IMAGE_SIZE = 224
PATCH_W = 15
STRIDE = 30
NUM_PATCHES = 7
_MIN_W = (NUM_PATCHES - 1) * STRIDE + PATCH_W   # 195

_LANES = 128
_MAX_BLOCK_BYTES = 2 << 20   # per-buffer cap; keeps total pipeline VMEM < ~12 MiB


def _mul_kernel(prompt_ref, x_ref, out_ref):
    # Pure memory-bound broadcasted multiply: one VPU mul per loaded vreg.
    out_ref[...] = x_ref[...] * prompt_ref[...]


def build_prompt(patches, W, dtype):
    """Dense (C, H, W) prompt: patches at columns 0, 30, ..., 180; zeros elsewhere.

    Built with a single zeros + one static-index scatter. Compute this once per
    set of patches and pass it via `vertical_lines(..., prompt=...)` to cache
    the build across calls.
    """
    num, C, H, pw = patches.shape
    cols = (np.arange(num)[:, None] * STRIDE + np.arange(pw)[None, :]).reshape(-1)
    vals = jnp.moveaxis(patches.astype(dtype), 0, 2).reshape(C, H, num * pw)
    return jnp.zeros((C, H, W), dtype=dtype).at[:, :, cols].set(vals)


def _native_rows(itemsize):
    # Rows per vreg tile for the dtype's native packing (f32 -> 8, bf16 -> 16, int8 -> 32).
    return {4: 8, 2: 16, 1: 32}.get(itemsize, 8)


def _choose_col_tile(ncols, rows, itemsize):
    """Largest 128-multiple divisor of ncols whose block fits the VMEM cap."""
    if rows * ncols * itemsize <= _MAX_BLOCK_BYTES:
        return ncols
    nlane_blocks = ncols // _LANES
    best = _LANES
    for d in range(1, nlane_blocks + 1):
        if nlane_blocks % d == 0:
            t = d * _LANES
            if rows * t * itemsize <= _MAX_BLOCK_BYTES:
                best = max(best, t)
    return best


def vertical_lines(x, patches, *, prompt=None, donate_x=False):
    """x: (B, C, H, W), patches: (7, C, H, 15) -> (B, C, H, W) = x * prompt."""
    B, C, H, W = x.shape
    N = C * H * W
    assert W >= _MIN_W, f"image width must be >= {_MIN_W} (last patch at 180:195)"

    if prompt is None:
        prompt = build_prompt(patches, W, x.dtype)          # (C, H, W), one-time cost
    prompt = prompt.astype(x.dtype)

    itemsize = jnp.dtype(x.dtype).itemsize

    # Lane-dense flat layout: each batch element becomes a (rows, ncols) slab
    # with ncols a multiple of 128 -> full-width unmasked vld/vst, no tail masks.
    rows = _native_rows(itemsize)
    if N % (rows * _LANES) != 0:
        rows = 8                                            # safe fallback packing
    assert N % (rows * _LANES) == 0, "C*H*W must be a multiple of rows*128"
    ncols = N // rows

    x_flat = x.reshape(B * rows, ncols)                     # rows [b*rows,(b+1)*rows) = batch b
    prompt_flat = prompt.reshape(rows, ncols)

    # Column tiling only kicks in for large images (keeps VMEM bounded on v7x/v5e).
    T = _choose_col_tile(ncols, rows, itemsize)
    num_col_tiles = ncols // T

    # Prompt: resident across the whole grid when untiled -> single buffer.
    prompt_kwargs = {"pipeline_mode": pl.Buffered(1)} if num_col_tiles == 1 else {}
    prompt_spec = pl.BlockSpec((rows, T), lambda j, b: (0, j), **prompt_kwargs)

    # x: deeper input buffering only pays off for larger batches.
    x_kwargs = {"pipeline_mode": pl.Buffered(3)} if (B >= 4 and num_col_tiles == 1) else {}
    x_spec = pl.BlockSpec((rows, T), lambda j, b: (b, j), **x_kwargs)

    out_spec = pl.BlockSpec((rows, T), lambda j, b: (b, j))

    kwargs = {}
    if donate_x:
        # prompt is input 0, x_flat is input 1; alias x's buffer to the output.
        kwargs["input_output_aliases"] = {1: 0}

    out_flat = pl.pallas_call(
        _mul_kernel,
        out_shape=jax.ShapeDtypeStruct((B * rows, ncols), x.dtype),
        # Column axis OUTER so the prompt block index is constant over the inner
        # (batch) axis and is never re-fetched; batch axis feeds megacore on v7x.
        grid=(num_col_tiles, B),
        in_specs=[prompt_spec, x_spec],
        out_specs=out_spec,
        compiler_params=pltpu.CompilerParams(
            dimension_semantics=("parallel", "parallel")),
        cost_estimate=pl.CostEstimate(
            flops=B * N,
            transcendentals=0,
            bytes_accessed=(2 * B * N + N) * itemsize),
        **kwargs,
    )(prompt_flat, x_flat)

    return out_flat.reshape(B, C, H, W)


def vertical_lines_reference(x, patches):
    """Plain-JAX reference mirroring the PyTorch forward."""
    B, C, H, W = x.shape
    prompt = jnp.zeros((1, C, H, W), dtype=x.dtype)
    for i in range(NUM_PATCHES):
        off = i * STRIDE
        prompt = prompt.at[:, :, :, off:off + PATCH_W].set(
            patches[i].astype(x.dtype)[None])
    prompt = jnp.tile(prompt, (B, 1, 1, 1))
    return x * prompt


if __name__ == "__main__":
    key = jax.random.PRNGKey(0)
    k_patch, k_x = jax.random.split(key)

    # 7 patches of shape (3, image_size, 15), stacked -> (7, 3, H, 15).
    patches = jax.random.normal(
        k_patch, (NUM_PATCHES, 3, IMAGE_SIZE, PATCH_W), dtype=jnp.float32)

    # Small batch input, NCHW. image_size is effectively fixed >= 195 by the
    # module's hard-coded patch offsets, so 224 is the canonical small shape.
    x = jax.random.normal(k_x, (2, 3, IMAGE_SIZE, IMAGE_SIZE), dtype=jnp.float32)

    # Precompute (cache) the prompt once per set of patches.
    prompt = build_prompt(patches, IMAGE_SIZE, x.dtype)

    out = jax.block_until_ready(vertical_lines(x, patches, prompt=prompt))

    ref = vertical_lines_reference(x, patches)
    assert out.shape == x.shape
    assert jnp.allclose(out, ref, atol=1e-6, rtol=1e-6)

    # Aliased (in-place-capable) path: same kernel, output buffer aliases x.
    out_alias = jax.block_until_ready(
        vertical_lines(x, patches, prompt=prompt, donate_x=True))
    assert jnp.allclose(out_alias, ref, atol=1e-6, rtol=1e-6)

    print("KERNEL_OK")
</pallas_src>

<mosaic_0001>
module attributes {stable_mosaic.version = 11 : i64} {
  func.func @_mul_kernel(%arg0: i32, %arg1: i32, %arg2: memref<8x18816xf32, #tpu.memory_space<vmem>>, %arg3: memref<8x18816xf32, #tpu.memory_space<vmem>>, %arg4: memref<8x18816xf32, #tpu.memory_space<vmem>>) attributes {dimension_semantics = [#tpu.dimension_semantics<parallel>, #tpu.dimension_semantics<parallel>], iteration_bounds = array<i64: 1, 2>, scalar_prefetch = 0 : i64, scratch_operands = 0 : i64, tpu.core_type = #tpu.core_type<tc>, window_params = [{pipeline_mode = #tpu.pipeline_mode<synchronous>, transform_indices = @transform_0, window_bounds = array<i64: 8, 18816>}, {transform_indices = @transform_1, window_bounds = array<i64: 8, 18816>}, {transform_indices = @transform_2, window_bounds = array<i64: 8, 18816>}]} {
    %c0 = arith.constant 0 : index
    %c0_0 = arith.constant 0 : index
    %0 = vector.load %arg3[%c0, %c0_0] : memref<8x18816xf32, #tpu.memory_space<vmem>>, vector<8x18816xf32>
    %c0_1 = arith.constant 0 : index
    %c0_2 = arith.constant 0 : index
    %1 = vector.load %arg2[%c0_1, %c0_2] : memref<8x18816xf32, #tpu.memory_space<vmem>>, vector<8x18816xf32>
    %2 = arith.mulf %0, %1 : vector<8x18816xf32>
    %c0_3 = arith.constant 0 : index
    %c0_4 = arith.constant 0 : index
    %3 = vector.load %arg4[%c0_3, %c0_4] : memref<8x18816xf32, #tpu.memory_space<vmem>>, vector<8x18816xf32>
    tpu.vector_store %arg4[%c0_3, %c0_4], %2 {strides = array<i32>} : memref<8x18816xf32, #tpu.memory_space<vmem>>, vector<8x18816xf32>,
    return
  }
  func.func @transform_0(%arg0: i32, %arg1: i32) -> (i32, i32) {
    %c0_i32 = arith.constant 0 : i32
    %c0_i32_0 = arith.constant 0 : i32
    return %c0_i32, %arg0 : i32, i32
  }
  func.func @transform_1(%arg0: i32, %arg1: i32) -> (i32, i32) {
    %c0_i32 = arith.constant 0 : i32
    return %arg1, %arg0 : i32, i32
  }
  func.func @transform_2(%arg0: i32, %arg1: i32) -> (i32, i32) {
    %c0_i32 = arith.constant 0 : i32
    return %arg1, %arg0 : i32, i32
  }
}

</mosaic_0001>

<bundles_post_ra>
// kernel: tpu_custom_call.1
= control target key start
LH: loop header
LB: loop body
LE: loop exit
PB: predicated region body
PF: predicated region fallthrough
CT: control target
= control target key end

     0   :  { %7 = vsyncpa [#allocation3], 0  ;;  %s1672_s0 = inlined_call_operand.hbm [shape: f32[8,18816], index: 0, kind: input, shape index: {}]   ;;  %s1673_s1 = inlined_call_operand.hbm [shape: f32[16,18816], index: 1, kind: input, shape index: {}]   ;;  %s1674_s2 = inlined_call_operand.hbm [shape: f32[16,18816], index: 2, kind: output, shape index: {}]  }
   0x1   :  { %8 = vsyncpa [#allocation6], 0 }
   0x2   :  { %10 = vsyncpa [#allocation6 + $0x1], 0 }
   0x3   :  { %11 = vsyncpa [#allocation4], 0 }
   0x4   :  { %13 = vsyncpa [#allocation4 + $0x1], 0  ;;  %s1157_s9 = smov 0   ;;  %s1159_s10 = smov 0  }
   0x5   :  { %s1161_s11 = smov 0   ;;  %s1163_s12 = smov 0  }
   0x6   :  { %s1165_s13 = smov 0   ;;  %s1167_s14 = smov 0  }
   0x7 LB: > { %s905_s15 = sadd.s32 4294967295, %s1137_s14   ;;  %s906_s16 = sadd.s32 4294967294, %s1137_s14   ;;  %s1137_s14 = sphi %s1167_s14, %s19_s14   ;;  %s1133_s13 = sphi %s1165_s13, %s1699_s13   ;;  %s1129_s12 = sphi %s1163_s12, %s1698_s12   ;;  %s1125_s11 = sphi %s1161_s11, %s1697_s11   ;;  %s1121_s10 = sphi %s1159_s10, %s1696_s10   ;;  %s1117_s9 = sphi %s1157_s9, %s1695_s9  }
   0x8   : > { %p79_p0 = scmp.ne.s32.totalorder %s1121_s10, %s1117_s9  ;;  %p1191_p1 = scmp.eq.s32.totalorder %s905_s15, 0 }
   0x9   : > { %p1195_p2 = scmp.eq.s32.totalorder %s905_s15, 1  ;;  %p111_p3 = scmp.eq.s32.totalorder %s906_s16, 1 }
   0xa   : > { %s1679_s17 = scalar_select %p1191_p1, 1, 0 }
   0xb   : > { %s1680_s18 = scalar_select %p1195_p2, 1, 0 }
   0xc   : > { %p1201_p4 = por %p1191_p1, %p79_p0  ;;  %p907_p5 = scmp.ge.s32.totalorder %s1137_s14, 1 }
   0xd   : > { %p1206_p6 = por %p111_p3, %p79_p0  ;;  %p118_p7 = scmp.lt.s32.totalorder %s1137_s14, 3 }
   0xe   : > { %s1681_s19 = scalar_select %p1201_p4, 1, 0 }
   0xf   : > { %s1682_s20 = scalar_select %p1206_p6, 1, 0 }
  0x10   : > { %p1211_p8 = pnand %p907_p5, %p118_p7  ;;  %s1139_s22 = smov [#allocation2]  }
  0x11   : > { %s134_s23 = sshll.u32 %s1139_s22, 4  ;;  %s28_s25 = sadd.s32 1, %s1133_s13  ;;  %s135_s23 = int_to_ptr.vmem [resolvable:$true] %s134_s23 }
  0x12   : > { %s1683_s21 = scalar_select %p1211_p8, 1, 0 }
  0x13   : > { %p928_p10 = pneg %p1211_p8  ;;  %s66_s26 = sadd.s32 1, %s1125_s11 }
  0x14   : > { %p1226_p12 = scmp.ge.s32.totalorder %s28_s25, 2  ;;  %s993_s30 = scalar_lea.hbm %s1672_s0, 18816 }
  0x15   : > { %p1220_p11 = pnand %p928_p10, %p1191_p1  ;;  %p994_p13 = scmp.ne.s32.totalorder %s1672_s0, %s993_s30 }
  0x16   : > { %s1685_s27 = scalar_select %p1226_p12, 1, 0 }
  0x17   : > { %p995_p0 = pneg %p1220_p11  ;;  %p1000_p7 = scmp.lt.u32.totalorder %s993_s30, %s1672_s0 }
  0x19   : > { %p996_p3 = pnand %p995_p0, %p994_p13 }
  0x1b   : > { %p997_p5 = pneg %p996_p3 }
  0x1d   : > { %p1002_p10 = pnand %p1000_p7, %p997_p5 }
  0x1f   : > { %1005 = shalt.err (!%p1002_p10)
}
  0x20   : > { %s1006_s7 = scalar_lea.vmem %s135_s23, 18816  ;;  %p1014_p1 = scmp.lt.s32.totalorder %s135_s23, %s135_s23 }
  0x21   : > { %p1007_p9 = scmp.ne.s32.totalorder %s135_s23, %s1006_s7  ;;  %p1015_p8 = scmp.lt.s32.totalorder %s1006_s7, %s1006_s7 }
  0x23   : > { %p1009_p6 = pnand %p1007_p9, %p995_p0  ;;  %p1016_p2 = por %p1015_p8, %p1014_p1 }
  0x25   : > { %p1010_p4 = pneg %p1009_p6 }
  0x27   : > { %p1017_p12 = pnand %p1016_p2, %p1010_p4 }
  0x29   : > { %1020 = shalt.err (!%p1017_p12)
}
  0x2a   : > { %931 = dma.hbm_to_vmem [thread:$0]  (!%p1220_p11), %s1672_s0, 18816, %s135_s23, [#allocation3]  }
  0x2b   : > { %p1686_p1 = scmp.ne.s32.totalorder %s1685_s27, 0  ;;  %p73_p2 = scmp.ne.s32.totalorder %s1125_s11, %s1121_s10 }
  0x2c   : > { %p74_p4 = scmp.eq.s32.totalorder %s1137_s14, 0  ;;  %p941_p6 = scmp.lt.s32.totalorder %s1137_s14, 2 }
  0x2d   : > { %s1701_s25 = smov (%p1686_p1, %s28_s25), 0  ;;  %p1687_p12 = scmp.ne.s32.totalorder %s1680_s18, 0 }
  0x2e   : > { %s61_s16 = ssub.s32 %s1133_s13, %s1701_s25  ;;  %p75_p9 = por %p74_p4, %p73_p2 }
  0x2f   : > { %p64_p8 = scmp.eq.s32.totalorder %s61_s16, 0  ;;  %p1258_p13 = por %p1687_p12, %p73_p2 }
  0x30   : > { %s145_s24 = sand.u32 1, %s1125_s11   ;;  %s917_s27 = smul.u32 18816, %s1133_s13 }
  0x31   : > { %s1266_s28 = scalar_select %p64_p8, %s1125_s11, %s66_s26  }
  0x32   : > { %s916_s23 = smul.u32 1176, %s145_s24  ;;  %p1269_p11 = pnand %p941_p6, %p75_p9 }
  0x33   : > { %s1276_s18 = scalar_lea.hbm %s1673_s1, %s917_s27  ;;  %s146_s5 = scalar_lea.sflag [#allocation6], %s145_s24 }
  0x34   : > { %s149_s4 = scalar_lea.vmem [#allocation5], %s916_s23  ;;  %s1021_s6 = scalar_lea.hbm %s1276_s18, 18816 }
  0x35   : > { %s159_s26 = sshll.u32 %s149_s4, 4  ;;  %p1022_p0 = scmp.ne.s32.totalorder %s1276_s18, %s1021_s6  ;;  %s1278_s26 = int_to_ptr.vmem [resolvable:$true] %s159_s26 }
  0x36   : > { %p1023_p3 = pneg %p1269_p11  ;;  %s1026_s15 = scalar_lea.hbm %s1673_s1, 37632 }
  0x37   : > { %p1027_p10 = scmp.lt.u32.totalorder %s1276_s18, %s1673_s1  ;;  %p1028_p1 = scmp.lt.u32.totalorder %s1026_s15, %s1021_s6 }
  0x38   : > { %p1024_p5 = pnand %p1023_p3, %p1022_p0  ;;  %p1030_p4 = scmp.lt.u32.totalorder %s1021_s6, %s1276_s18 }
  0x39   : > { %p1029_p2 = por %p1028_p1, %p1027_p10 }
  0x3a   : > { %p1025_p7 = pneg %p1024_p5 }
  0x3b   : > { %p1031_p6 = por %p1030_p4, %p1029_p2 }
  0x3d   : > { %p1032_p8 = pnand %p1031_p6, %p1025_p7 }
  0x3f   : > { %1035 = shalt.err (!%p1032_p8)
}
  0x40   : > { %s1036_s24 = scalar_lea.vmem %s1278_s26, 18816  ;;  %s1140_s23 = smov [#allocation5]  }
  0x41   : > { %p1037_p9 = scmp.ne.s32.totalorder %s1278_s26, %s1036_s24  ;;  %s1041_s30 = sshll.u32 %s1140_s23, 4  ;;  %s1042_s30 = int_to_ptr.vmem [resolvable:$false] %s1041_s30 }
  0x42   : > { %s1043_s3 = scalar_lea.vmem %s1042_s30, 37632  ;;  %p1044_p5 = scmp.lt.s32.totalorder %s1278_s26, %s1042_s30 }
  0x43   : > { %p1039_p12 = pnand %p1037_p9, %p1023_p3  ;;  %p1045_p10 = scmp.lt.s32.totalorder %s1043_s3, %s1036_s24 }
  0x45   : > { %p1040_p0 = pneg %p1039_p12  ;;  %p1046_p1 = por %p1045_p10, %p1044_p5 }
  0x47   : > { %p1047_p2 = pnand %p1046_p1, %p1040_p0 }
  0x49   : > { %1050 = shalt.err (!%p1047_p2)
}
  0x4a   : > { %935 = dma.hbm_to_vmem [thread:$0]  (!%p1269_p11), %s1276_s18, 18816, %s1278_s26, %s146_s5  }
  0x4b   : > { %p1690_p7 = scmp.ne.s32.totalorder %s1683_s21, 0 }
  0x4c   : > { %p1691_p3 = scmp.ne.s32.totalorder (!%p1690_p7), %s1679_s17, 0 }
  0x4d   : > { %168 = sbr.rel (%p1690_p7) target bundleno = 217 (0xd9), region = 28 }
  0x54   : > { %1104 = dma.done.wait (%p1691_p3), [#allocation3], 18816  }
  0x55   : > { %1106 = vsyncadd (%p1691_p3), [#allocation3], 4294948480  ;;  %s1312_s4 = sand.u32 1, %s1121_s10   ;;  %p1692_p11 = scmp.ne.s32.totalorder %s1681_s19, 0 }
  0x56   : > { %s918_s6 = smul.u32 1176, %s1312_s4  ;;  %s175_s29 = scalar_lea.sflag [#allocation6], %s1312_s4 }
  0x58   : > { %s1316_s7 = scalar_lea.vmem [#allocation5], %s918_s6 }
  0x59   : > { %1108 = dma.done.wait (%p1692_p11), %s175_s29, 18816  }
  0x5a   : > { %1110 = vsyncadd (%p1692_p11), %s175_s29, 4294948480  ;;  %v202_v0 = vld [vmem:[%s1316_s7] sm:$0xff]  ;;  %v349_v1 = vld [vmem:[#allocation2] sm:$0xff]  ;;  %s1327_s17 = scalar_lea.vmem [#allocation7], %s918_s6  ;;  %s919_s19 = smul.u32 18816, %s1129_s12 }
  0x5b   : > { %v203_v2 = vld [vmem:[%s1316_s7 + $0x8] sm:$0xff]  ;;  %v496_v3 = vmul.f32 %v349_v1, %v202_v0  ;;  %v350_v4 = vld [vmem:[#allocation2 + $0x8] sm:$0xff]  ;;  %v351_v6 = vld [vmem:[#allocation2 + $0x10] sm:$0xff]  ;;  %s807_s21 = sshll.u32 %s1327_s17, 4  ;;  %s791_s5 = scalar_lea.sflag [#allocation4], %s1312_s4  ;;  %s1622_s21 = int_to_ptr.vmem [resolvable:$true] %s807_s21 }
  0x5c   : > { %v204_v5 = vld [vmem:[%s1316_s7 + $0x10] sm:$0xff]  ;;  %v497_v7 = vmul.f32 %v350_v4, %v203_v2  ;;  %v205_v9 = vld [vmem:[%s1316_s7 + $0x18] sm:$0xff]  ;;  %v352_v10 = vld [vmem:[#allocation2 + $0x18] sm:$0xff]  ;;  %s1620_s26 = scalar_lea.hbm %s1674_s2, %s919_s19  ;;  %s1051_s8 = scalar_lea.vmem %s1622_s21, 18816 }
  0x5d   : > { %v498_v8 = vmul.f32 %v351_v6, %v204_v5  ;;  %v206_v11 = vld [vmem:[%s1316_s7 + $0x20] sm:$0xff]  ;;  %643 = vst [vmem:[%s1327_s17] sm:$0xff] %v496_v3  ;;  %v499_v12 = vmul.f32 %v352_v10, %v205_v9  ;;  %v353_v13 = vld [vmem:[#allocation2 + $0x20] sm:$0xff]  ;;  %v354_v15 = vld [vmem:[#allocation2 + $0x28] sm:$0xff]  ;;  %p1052_p4 = scmp.ne.s32.totalorder %s1622_s21, %s1051_s8  ;;  %s1141_s15 = smov [#allocation7]  }
  0x5e   : > { %v207_v14 = vld [vmem:[%s1316_s7 + $0x28] sm:$0xff]  ;;  %644 = vst [vmem:[%s1327_s17 + $0x8] sm:$0xff] %v497_v7  ;;  %v500_v16 = vmul.f32 %v353_v13, %v206_v11  ;;  %v208_v18 = vld [vmem:[%s1316_s7 + $0x30] sm:$0xff]  ;;  %v355_v19 = vld [vmem:[#allocation2 + $0x30] sm:$0xff]  ;;  %s1055_s16 = sshll.u32 %s1141_s15, 4  ;;  %s1056_s16 = int_to_ptr.vmem [resolvable:$false] %s1055_s16 }
  0x5f   : > { %645 = vst [vmem:[%s1327_s17 + $0x10] sm:$0xff] %v498_v8  ;;  %v501_v17 = vmul.f32 %v354_v15, %v207_v14  ;;  %v209_v20 = vld [vmem:[%s1316_s7 + $0x38] sm:$0xff]  ;;  %646 = vst [vmem:[%s1327_s17 + $0x18] sm:$0xff] %v499_v12  ;;  %v502_v21 = vmul.f32 %v355_v19, %v208_v18  ;;  %v356_v22 = vld [vmem:[#allocation2 + $0x38] sm:$0xff]  ;;  %p1053_p6 = pnand %p1052_p4, %p1258_p13  ;;  %s1057_s27 = scalar_lea.vmem %s1056_s16, 37632 }
  0x60   : > { %v210_v23 = vld [vmem:[%s1316_s7 + $0x40] sm:$0xff]  ;;  %v357_v24 = vld [vmem:[#allocation2 + $0x40] sm:$0xff]  ;;  %647 = vst [vmem:[%s1327_s17 + $0x20] sm:$0xff] %v500_v16  ;;  %v503_v25 = vmul.f32 %v356_v22, %v209_v20  ;;  %v358_v28 = vld [vmem:[#allocation2 + $0x48] sm:$0xff]  ;;  %p1058_p9 = scmp.lt.s32.totalorder %s1622_s21, %s1056_s16  ;;  %p1059_p12 = scmp.lt.s32.totalorder %s1057_s27, %s1051_s8 }
  0x61   : > { %648 = vst [vmem:[%s1327_s17 + $0x28] sm:$0xff] %v501_v17  ;;  %v504_v26 = vmul.f32 %v357_v24, %v210_v23  ;;  %v211_v27 = vld [vmem:[%s1316_s7 + $0x48] sm:$0xff]  ;;  %v212_v29 = vld [vmem:[%s1316_s7 + $0x50] sm:$0xff]  ;;  %649 = vst [vmem:[%s1327_s17 + $0x30] sm:$0xff] %v502_v21  ;;  %p1054_p8 = pneg %p1053_p6 }
  0x62   : > { %v505_v30 = vmul.f32 %v358_v28, %v211_v27  ;;  %v359_v31 = vld [vmem:[#allocation2 + $0x50] sm:$0xff]  ;;  %v360_v33 = vld [vmem:[#allocation2 + $0x58] sm:$0xff]  ;;  %650 = vst [vmem:[%s1327_s17 + $0x38] sm:$0xff] %v503_v25  ;;  %v361_v37 = vld [vmem:[#allocation2 + $0x60] sm:$0xff]  ;;  %p1060_p0 = por %p1059_p12, %p1058_p9 }
  0x63   : > { %v213_v32 = vld [vmem:[%s1316_s7 + $0x58] sm:$0xff]  ;;  %651 = vst [vmem:[%s1327_s17 + $0x40] sm:$0xff] %v504_v26  ;;  %v506_v34 = vmul.f32 %v359_v31, %v212_v29  ;;  %v214_v36 = vld [vmem:[%s1316_s7 + $0x60] sm:$0xff]  ;;  %v215_v38 = vld [vmem:[%s1316_s7 + $0x68] sm:$0xff] }
  0x64   : > { %v507_v35 = vmul.f32 %v360_v33, %v213_v32  ;;  %652 = vst [vmem:[%s1327_s17 + $0x48] sm:$0xff] %v505_v30  ;;  %v508_v39 = vmul.f32 %v361_v37, %v214_v36  ;;  %v362_v40 = vld [vmem:[#allocation2 + $0x68] sm:$0xff]  ;;  %v363_v42 = vld [vmem:[#allocation2 + $0x70] sm:$0xff]  ;;  %v364_v46 = vld [vmem:[#allocation2 + $0x78] sm:$0xff]  ;;  %p1061_p5 = pnand %p1060_p0, %p1054_p8 }
  0x65   : > { %v216_v41 = vld [vmem:[%s1316_s7 + $0x70] sm:$0xff]  ;;  %653 = vst [vmem:[%s1327_s17 + $0x50] sm:$0xff] %v506_v34  ;;  %v509_v43 = vmul.f32 %v362_v40, %v215_v38  ;;  %v217_v45 = vld [vmem:[%s1316_s7 + $0x78] sm:$0xff]  ;;  %v218_v47 = vld [vmem:[%s1316_s7 + $0x80] sm:$0xff] }
  0x66   : > { %654 = vst [vmem:[%s1327_s17 + $0x58] sm:$0xff] %v507_v35  ;;  %v510_v44 = vmul.f32 %v363_v42, %v216_v41  ;;  %655 = vst [vmem:[%s1327_s17 + $0x60] sm:$0xff] %v508_v39  ;;  %v511_v48 = vmul.f32 %v364_v46, %v217_v45  ;;  %v365_v49 = vld [vmem:[#allocation2 + $0x80] sm:$0xff]  ;;  %v366_v51 = vld [vmem:[#allocation2 + $0x88] sm:$0xff] }
  0x67   : > { %v219_v50 = vld [vmem:[%s1316_s7 + $0x88] sm:$0xff]  ;;  %656 = vst [vmem:[%s1327_s17 + $0x68] sm:$0xff] %v509_v43  ;;  %v512_v52 = vmul.f32 %v365_v49, %v218_v47  ;;  %v220_v54 = vld [vmem:[%s1316_s7 + $0x90] sm:$0xff]  ;;  %v367_v55 = vld [vmem:[#allocation2 + $0x90] sm:$0xff] }
  0x68   : > { %657 = vst [vmem:[%s1327_s17 + $0x70] sm:$0xff] %v510_v44  ;;  %v513_v53 = vmul.f32 %v366_v51, %v219_v50  ;;  %v221_v56 = vld [vmem:[%s1316_s7 + $0x98] sm:$0xff]  ;;  %658 = vst [vmem:[%s1327_s17 + $0x78] sm:$0xff] %v511_v48  ;;  %v514_v57 = vmul.f32 %v367_v55, %v220_v54  ;;  %v368_v58 = vld [vmem:[#allocation2 + $0x98] sm:$0xff] }
  0x69   : > { %v222_v59 = vld [vmem:[%s1316_s7 + $0xa0] sm:$0xff]  ;;  %v369_v60 = vld [vmem:[#allocation2 + $0xa0] sm:$0xff]  ;;  %659 = vst [vmem:[%s1327_s17 + $0x80] sm:$0xff] %v512_v52  ;;  %v515_v61 = vmul.f32 %v368_v58, %v221_v56  ;;  %v370_v0 = vld [vmem:[#allocation2 + $0xa8] sm:$0xff] }
  0x6a   : > { %660 = vst [vmem:[%s1327_s17 + $0x88] sm:$0xff] %v513_v53  ;;  %v516_v62 = vmul.f32 %v369_v60, %v222_v59  ;;  %v223_v63 = vld [vmem:[%s1316_s7 + $0xa8] sm:$0xff]  ;;  %v224_v1 = vld [vmem:[%s1316_s7 + $0xb0] sm:$0xff]  ;;  %661 = vst [vmem:[%s1327_s17 + $0x90] sm:$0xff] %v514_v57 }
  0x6b   : > { %v517_v2 = vmul.f32 %v370_v0, %v223_v63  ;;  %v371_v3 = vld [vmem:[#allocation2 + $0xb0] sm:$0xff]  ;;  %v372_v5 = vld [vmem:[#allocation2 + $0xb8] sm:$0xff]  ;;  %662 = vst [vmem:[%s1327_s17 + $0x98] sm:$0xff] %v515_v61  ;;  %v373_v9 = vld [vmem:[#allocation2 + $0xc0] sm:$0xff] }
  0x6c   : > { %v225_v4 = vld [vmem:[%s1316_s7 + $0xb8] sm:$0xff]  ;;  %663 = vst [vmem:[%s1327_s17 + $0xa0] sm:$0xff] %v516_v62  ;;  %v518_v6 = vmul.f32 %v371_v3, %v224_v1  ;;  %v226_v8 = vld [vmem:[%s1316_s7 + $0xc0] sm:$0xff]  ;;  %v227_v10 = vld [vmem:[%s1316_s7 + $0xc8] sm:$0xff] }
  0x6d   : > { %v519_v7 = vmul.f32 %v372_v5, %v225_v4  ;;  %664 = vst [vmem:[%s1327_s17 + $0xa8] sm:$0xff] %v517_v2  ;;  %v520_v11 = vmul.f32 %v373_v9, %v226_v8  ;;  %v374_v12 = vld [vmem:[#allocation2 + $0xc8] sm:$0xff]  ;;  %v375_v14 = vld [vmem:[#allocation2 + $0xd0] sm:$0xff]  ;;  %v376_v18 = vld [vmem:[#allocation2 + $0xd8] sm:$0xff] }
  0x6e   : > { %v228_v13 = vld [vmem:[%s1316_s7 + $0xd0] sm:$0xff]  ;;  %665 = vst [vmem:[%s1327_s17 + $0xb0] sm:$0xff] %v518_v6  ;;  %v521_v15 = vmul.f32 %v374_v12, %v227_v10  ;;  %v229_v17 = vld [vmem:[%s1316_s7 + $0xd8] sm:$0xff]  ;;  %v230_v19 = vld [vmem:[%s1316_s7 + $0xe0] sm:$0xff] }
  0x6f   : > { %666 = vst [vmem:[%s1327_s17 + $0xb8] sm:$0xff] %v519_v7  ;;  %v522_v16 = vmul.f32 %v375_v14, %v228_v13  ;;  %667 = vst [vmem:[%s1327_s17 + $0xc0] sm:$0xff] %v520_v11  ;;  %v523_v20 = vmul.f32 %v376_v18, %v229_v17  ;;  %v377_v21 = vld [vmem:[#allocation2 + $0xe0] sm:$0xff]  ;;  %v378_v23 = vld [vmem:[#allocation2 + $0xe8] sm:$0xff] }
  0x70   : > { %v231_v22 = vld [vmem:[%s1316_s7 + $0xe8] sm:$0xff]  ;;  %668 = vst [vmem:[%s1327_s17 + $0xc8] sm:$0xff] %v521_v15  ;;  %v524_v24 = vmul.f32 %v377_v21, %v230_v19  ;;  %v232_v26 = vld [vmem:[%s1316_s7 + $0xf0] sm:$0xff]  ;;  %v379_v27 = vld [vmem:[#allocation2 + $0xf0] sm:$0xff] }
  0x71   : > { %669 = vst [vmem:[%s1327_s17 + $0xd0] sm:$0xff] %v522_v16  ;;  %v525_v25 = vmul.f32 %v378_v23, %v231_v22  ;;  %v233_v28 = vld [vmem:[%s1316_s7 + $0xf8] sm:$0xff]  ;;  %670 = vst [vmem:[%s1327_s17 + $0xd8] sm:$0xff] %v523_v20  ;;  %v526_v29 = vmul.f32 %v379_v27, %v232_v26  ;;  %v380_v30 = vld [vmem:[#allocation2 + $0xf8] sm:$0xff] }
  0x72   : > { %v234_v31 = vld [vmem:[%s1316_s7 + $0x100] sm:$0xff]  ;;  %v381_v32 = vld [vmem:[#allocation2 + $0x100] sm:$0xff]  ;;  %671 = vst [vmem:[%s1327_s17 + $0xe0] sm:$0xff] %v524_v24  ;;  %v527_v33 = vmul.f32 %v380_v30, %v233_v28  ;;  %v382_v36 = vld [vmem:[#allocation2 + $0x108] sm:$0xff] }
  0x73   : > { %672 = vst [vmem:[%s1327_s17 + $0xe8] sm:$0xff] %v525_v25  ;;  %v528_v34 = vmul.f32 %v381_v32, %v234_v31  ;;  %v235_v35 = vld [vmem:[%s1316_s7 + $0x108] sm:$0xff]  ;;  %v236_v37 = vld [vmem:[%s1316_s7 + $0x110] sm:$0xff]  ;;  %673 = vst [vmem:[%s1327_s17 + $0xf0] sm:$0xff] %v526_v29 }
  0x74   : > { %v529_v38 = vmul.f32 %v382_v36, %v235_v35  ;;  %v383_v39 = vld [vmem:[#allocation2 + $0x110] sm:$0xff]  ;;  %v384_v41 = vld [vmem:[#allocation2 + $0x118] sm:$0xff]  ;;  %674 = vst [vmem:[%s1327_s17 + $0xf8] sm:$0xff] %v527_v33  ;;  %v385_v45 = vld [vmem:[#allocation2 + $0x120] sm:$0xff] }
  0x75   : > { %v237_v40 = vld [vmem:[%s1316_s7 + $0x118] sm:$0xff]  ;;  %675 = vst [vmem:[%s1327_s17 + $0x100] sm:$0xff] %v528_v34  ;;  %v530_v42 = vmul.f32 %v383_v39, %v236_v37  ;;  %v238_v44 = vld [vmem:[%s1316_s7 + $0x120] sm:$0xff]  ;;  %v239_v46 = vld [vmem:[%s1316_s7 + $0x128] sm:$0xff] }
  0x76   : > { %v531_v43 = vmul.f32 %v384_v41, %v237_v40  ;;  %676 = vst [vmem:[%s1327_s17 + $0x108] sm:$0xff] %v529_v38  ;;  %v532_v47 = vmul.f32 %v385_v45, %v238_v44  ;;  %v386_v48 = vld [vmem:[#allocation2 + $0x128] sm:$0xff]  ;;  %v387_v50 = vld [vmem:[#allocation2 + $0x130] sm:$0xff]  ;;  %v388_v54 = vld [vmem:[#allocation2 + $0x138] sm:$0xff] }
  0x77   : > { %v240_v49 = vld [vmem:[%s1316_s7 + $0x130] sm:$0xff]  ;;  %677 = vst [vmem:[%s1327_s17 + $0x110] sm:$0xff] %v530_v42  ;;  %v533_v51 = vmul.f32 %v386_v48, %v239_v46  ;;  %v241_v53 = vld [vmem:[%s1316_s7 + $0x138] sm:$0xff]  ;;  %v242_v55 = vld [vmem:[%s1316_s7 + $0x140] sm:$0xff] }
  0x78   : > { %678 = vst [vmem:[%s1327_s17 + $0x118] sm:$0xff] %v531_v43  ;;  %v534_v52 = vmul.f32 %v387_v50, %v240_v49  ;;  %679 = vst [vmem:[%s1327_s17 + $0x120] sm:$0xff] %v532_v47  ;;  %v535_v56 = vmul.f32 %v388_v54, %v241_v53  ;;  %v389_v57 = vld [vmem:[#allocation2 + $0x140] sm:$0xff]  ;;  %v390_v59 = vld [vmem:[#allocation2 + $0x148] sm:$0xff] }
  0x79   : > { %v243_v58 = vld [vmem:[%s1316_s7 + $0x148] sm:$0xff]  ;;  %680 = vst [vmem:[%s1327_s17 + $0x128] sm:$0xff] %v533_v51  ;;  %v536_v60 = vmul.f32 %v389_v57, %v242_v55  ;;  %v244_v62 = vld [vmem:[%s1316_s7 + $0x150] sm:$0xff]  ;;  %v391_v63 = vld [vmem:[#allocation2 + $0x150] sm:$0xff] }
  0x7a   : > { %681 = vst [vmem:[%s1327_s17 + $0x130] sm:$0xff] %v534_v52  ;;  %v537_v61 = vmul.f32 %v390_v59, %v243_v58  ;;  %v245_v0 = vld [vmem:[%s1316_s7 + $0x158] sm:$0xff]  ;;  %682 = vst [vmem:[%s1327_s17 + $0x138] sm:$0xff] %v535_v56  ;;  %v538_v1 = vmul.f32 %v391_v63, %v244_v62  ;;  %v392_v2 = vld [vmem:[#allocation2 + $0x158] sm:$0xff] }
  0x7b   : > { %v246_v3 = vld [vmem:[%s1316_s7 + $0x160] sm:$0xff]  ;;  %v393_v4 = vld [vmem:[#allocation2 + $0x160] sm:$0xff]  ;;  %683 = vst [vmem:[%s1327_s17 + $0x140] sm:$0xff] %v536_v60  ;;  %v539_v5 = vmul.f32 %v392_v2, %v245_v0  ;;  %v394_v8 = vld [vmem:[#allocation2 + $0x168] sm:$0xff] }
  0x7c   : > { %684 = vst [vmem:[%s1327_s17 + $0x148] sm:$0xff] %v537_v61  ;;  %v540_v6 = vmul.f32 %v393_v4, %v246_v3  ;;  %v247_v7 = vld [vmem:[%s1316_s7 + $0x168] sm:$0xff]  ;;  %v248_v9 = vld [vmem:[%s1316_s7 + $0x170] sm:$0xff]  ;;  %685 = vst [vmem:[%s1327_s17 + $0x150] sm:$0xff] %v538_v1 }
  0x7d   : > { %v541_v10 = vmul.f32 %v394_v8, %v247_v7  ;;  %v395_v11 = vld [vmem:[#allocation2 + $0x170] sm:$0xff]  ;;  %v396_v13 = vld [vmem:[#allocation2 + $0x178] sm:$0xff]  ;;  %686 = vst [vmem:[%s1327_s17 + $0x158] sm:$0xff] %v539_v5  ;;  %v397_v17 = vld [vmem:[#allocation2 + $0x180] sm:$0xff] }
  0x7e   : > { %v249_v12 = vld [vmem:[%s1316_s7 + $0x178] sm:$0xff]  ;;  %687 = vst [vmem:[%s1327_s17 + $0x160] sm:$0xff] %v540_v6  ;;  %v542_v14 = vmul.f32 %v395_v11, %v248_v9  ;;  %v250_v16 = vld [vmem:[%s1316_s7 + $0x180] sm:$0xff]  ;;  %v251_v18 = vld [vmem:[%s1316_s7 + $0x188] sm:$0xff] }
  0x7f   : > { %v543_v15 = vmul.f32 %v396_v13, %v249_v12  ;;  %688 = vst [vmem:[%s1327_s17 + $0x168] sm:$0xff] %v541_v10  ;;  %v544_v19 = vmul.f32 %v397_v17, %v250_v16  ;;  %v398_v20 = vld [vmem:[#allocation2 + $0x188] sm:$0xff]  ;;  %v399_v22 = vld [vmem:[#allocation2 + $0x190] sm:$0xff]  ;;  %v400_v26 = vld [vmem:[#allocation2 + $0x198] sm:$0xff] }
  0x80   : > { %v252_v21 = vld [vmem:[%s1316_s7 + $0x190] sm:$0xff]  ;;  %689 = vst [vmem:[%s1327_s17 + $0x170] sm:$0xff] %v542_v14  ;;  %v545_v23 = vmul.f32 %v398_v20, %v251_v18  ;;  %v253_v25 = vld [vmem:[%s1316_s7 + $0x198] sm:$0xff]  ;;  %v254_v27 = vld [vmem:[%s1316_s7 + $0x1a0] sm:$0xff] }
  0x81   : > { %690 = vst [vmem:[%s1327_s17 + $0x178] sm:$0xff] %v543_v15  ;;  %v546_v24 = vmul.f32 %v399_v22, %v252_v21  ;;  %691 = vst [vmem:[%s1327_s17 + $0x180] sm:$0xff] %v544_v19  ;;  %v547_v28 = vmul.f32 %v400_v26, %v253_v25  ;;  %v401_v29 = vld [vmem:[#allocation2 + $0x1a0] sm:$0xff]  ;;  %v402_v31 = vld [vmem:[#allocation2 + $0x1a8] sm:$0xff] }
  0x82   : > { %v255_v30 = vld [vmem:[%s1316_s7 + $0x1a8] sm:$0xff]  ;;  %692 = vst [vmem:[%s1327_s17 + $0x188] sm:$0xff] %v545_v23  ;;  %v548_v32 = vmul.f32 %v401_v29, %v254_v27  ;;  %v256_v34 = vld [vmem:[%s1316_s7 + $0x1b0] sm:$0xff]  ;;  %v403_v35 = vld [vmem:[#allocation2 + $0x1b0] sm:$0xff] }
  0x83   : > { %693 = vst [vmem:[%s1327_s17 + $0x190] sm:$0xff] %v546_v24  ;;  %v549_v33 = vmul.f32 %v402_v31, %v255_v30  ;;  %v257_v36 = vld [vmem:[%s1316_s7 + $0x1b8] sm:$0xff]  ;;  %694 = vst [vmem:[%s1327_s17 + $0x198] sm:$0xff] %v547_v28  ;;  %v550_v37 = vmul.f32 %v403_v35, %v256_v34  ;;  %v404_v38 = vld [vmem:[#allocation2 + $0x1b8] sm:$0xff] }
  0x84   : > { %v258_v39 = vld [vmem:[%s1316_s7 + $0x1c0] sm:$0xff]  ;;  %v405_v40 = vld [vmem:[#allocation2 + $0x1c0] sm:$0xff]  ;;  %695 = vst [vmem:[%s1327_s17 + $0x1a0] sm:$0xff] %v548_v32  ;;  %v551_v41 = vmul.f32 %v404_v38, %v257_v36  ;;  %v406_v44 = vld [vmem:[#allocation2 + $0x1c8] sm:$0xff] }
  0x85   : > { %696 = vst [vmem:[%s1327_s17 + $0x1a8] sm:$0xff] %v549_v33  ;;  %v552_v42 = vmul.f32 %v405_v40, %v258_v39  ;;  %v259_v43 = vld [vmem:[%s1316_s7 + $0x1c8] sm:$0xff]  ;;  %v260_v45 = vld [vmem:[%s1316_s7 + $0x1d0] sm:$0xff]  ;;  %697 = vst [vmem:[%s1327_s17 + $0x1b0] sm:$0xff] %v550_v37 }
  0x86   : > { %v553_v46 = vmul.f32 %v406_v44, %v259_v43  ;;  %v407_v47 = vld [vmem:[#allocation2 + $0x1d0] sm:$0xff]  ;;  %v408_v49 = vld [vmem:[#allocation2 + $0x1d8] sm:$0xff]  ;;  %698 = vst [vmem:[%s1327_s17 + $0x1b8] sm:$0xff] %v551_v41  ;;  %v409_v53 = vld [vmem:[#allocation2 + $0x1e0] sm:$0xff] }
  0x87   : > { %v261_v48 = vld [vmem:[%s1316_s7 + $0x1d8] sm:$0xff]  ;;  %699 = vst [vmem:[%s1327_s17 + $0x1c0] sm:$0xff] %v552_v42  ;;  %v554_v50 = vmul.f32 %v407_v47, %v260_v45  ;;  %v262_v52 = vld [vmem:[%s1316_s7 + $0x1e0] sm:$0xff]  ;;  %v263_v54 = vld [vmem:[%s1316_s7 + $0x1e8] sm:$0xff] }
  0x88   : > { %v555_v51 = vmul.f32 %v408_v49, %v261_v48  ;;  %700 = vst [vmem:[%s1327_s17 + $0x1c8] sm:$0xff] %v553_v46  ;;  %v556_v55 = vmul.f32 %v409_v53, %v262_v52  ;;  %v410_v56 = vld [vmem:[#allocation2 + $0x1e8] sm:$0xff]  ;;  %v411_v58 = vld [vmem:[#allocation2 + $0x1f0] sm:$0xff]  ;;  %v412_v62 = vld [vmem:[#allocation2 + $0x1f8] sm:$0xff] }
  0x89   : > { %v264_v57 = vld [vmem:[%s1316_s7 + $0x1f0] sm:$0xff]  ;;  %701 = vst [vmem:[%s1327_s17 + $0x1d0] sm:$0xff] %v554_v50  ;;  %v557_v59 = vmul.f32 %v410_v56, %v263_v54  ;;  %v265_v61 = vld [vmem:[%s1316_s7 + $0x1f8] sm:$0xff]  ;;  %v266_v63 = vld [vmem:[%s1316_s7 + $0x200] sm:$0xff] }
  0x8a   : > { %702 = vst [vmem:[%s1327_s17 + $0x1d8] sm:$0xff] %v555_v51  ;;  %v558_v60 = vmul.f32 %v411_v58, %v264_v57  ;;  %703 = vst [vmem:[%s1327_s17 + $0x1e0] sm:$0xff] %v556_v55  ;;  %v559_v0 = vmul.f32 %v412_v62, %v265_v61  ;;  %v413_v1 = vld [vmem:[#allocation2 + $0x200] sm:$0xff]  ;;  %v414_v3 = vld [vmem:[#allocation2 + $0x208] sm:$0xff] }
  0x8b   : > { %v267_v2 = vld [vmem:[%s1316_s7 + $0x208] sm:$0xff]  ;;  %704 = vst [vmem:[%s1327_s17 + $0x1e8] sm:$0xff] %v557_v59  ;;  %v560_v4 = vmul.f32 %v413_v1, %v266_v63  ;;  %v268_v6 = vld [vmem:[%s1316_s7 + $0x210] sm:$0xff]  ;;  %v415_v7 = vld [vmem:[#allocation2 + $0x210] sm:$0xff] }
  0x8c   : > { %705 = vst [vmem:[%s1327_s17 + $0x1f0] sm:$0xff] %v558_v60  ;;  %v561_v5 = vmul.f32 %v414_v3, %v267_v2  ;;  %v269_v8 = vld [vmem:[%s1316_s7 + $0x218] sm:$0xff]  ;;  %706 = vst [vmem:[%s1327_s17 + $0x1f8] sm:$0xff] %v559_v0  ;;  %v562_v9 = vmul.f32 %v415_v7, %v268_v6  ;;  %v416_v10 = vld [vmem:[#allocation2 + $0x218] sm:$0xff] }
  0x8d   : > { %v270_v11 = vld [vmem:[%s1316_s7 + $0x220] sm:$0xff]  ;;  %v417_v12 = vld [vmem:[#allocation2 + $0x220] sm:$0xff]  ;;  %707 = vst [vmem:[%s1327_s17 + $0x200] sm:$0xff] %v560_v4  ;;  %v563_v13 = vmul.f32 %v416_v10, %v269_v8  ;;  %v418_v16 = vld [vmem:[#allocation2 + $0x228] sm:$0xff] }
  0x8e   : > { %708 = vst [vmem:[%s1327_s17 + $0x208] sm:$0xff] %v561_v5  ;;  %v564_v14 = vmul.f32 %v417_v12, %v270_v11  ;;  %v271_v15 = vld [vmem:[%s1316_s7 + $0x228] sm:$0xff]  ;;  %v272_v17 = vld [vmem:[%s1316_s7 + $0x230] sm:$0xff]  ;;  %709 = vst [vmem:[%s1327_s17 + $0x210] sm:$0xff] %v562_v9 }
  0x8f   : > { %v565_v18 = vmul.f32 %v418_v16, %v271_v15  ;;  %v419_v19 = vld [vmem:[#allocation2 + $0x230] sm:$0xff]  ;;  %v420_v21 = vld [vmem:[#allocation2 + $0x238] sm:$0xff]  ;;  %710 = vst [vmem:[%s1327_s17 + $0x218] sm:$0xff] %v563_v13  ;;  %v421_v25 = vld [vmem:[#allocation2 + $0x240] sm:$0xff] }
  0x90   : > { %v273_v20 = vld [vmem:[%s1316_s7 + $0x238] sm:$0xff]  ;;  %711 = vst [vmem:[%s1327_s17 + $0x220] sm:$0xff] %v564_v14  ;;  %v566_v22 = vmul.f32 %v419_v19, %v272_v17  ;;  %v274_v24 = vld [vmem:[%s1316_s7 + $0x240] sm:$0xff]  ;;  %v275_v26 = vld [vmem:[%s1316_s7 + $0x248] sm:$0xff] }
  0x91   : > { %v567_v23 = vmul.f32 %v420_v21, %v273_v20  ;;  %712 = vst [vmem:[%s1327_s17 + $0x228] sm:$0xff] %v565_v18  ;;  %v568_v27 = vmul.f32 %v421_v25, %v274_v24  ;;  %v422_v28 = vld [vmem:[#allocation2 + $0x248] sm:$0xff]  ;;  %v423_v30 = vld [vmem:[#allocation2 + $0x250] sm:$0xff]  ;;  %v424_v34 = vld [vmem:[#allocation2 + $0x258] sm:$0xff] }
  0x92   : > { %v276_v29 = vld [vmem:[%s1316_s7 + $0x250] sm:$0xff]  ;;  %713 = vst [vmem:[%s1327_s17 + $0x230] sm:$0xff] %v566_v22  ;;  %v569_v31 = vmul.f32 %v422_v28, %v275_v26  ;;  %v277_v33 = vld [vmem:[%s1316_s7 + $0x258] sm:$0xff]  ;;  %v278_v35 = vld [vmem:[%s1316_s7 + $0x260] sm:$0xff] }
  0x93   : > { %714 = vst [vmem:[%s1327_s17 + $0x238] sm:$0xff] %v567_v23  ;;  %v570_v32 = vmul.f32 %v423_v30, %v276_v29  ;;  %715 = vst [vmem:[%s1327_s17 + $0x240] sm:$0xff] %v568_v27  ;;  %v571_v36 = vmul.f32 %v424_v34, %v277_v33  ;;  %v425_v37 = vld [vmem:[#allocation2 + $0x260] sm:$0xff]  ;;  %v426_v39 = vld [vmem:[#allocation2 + $0x268] sm:$0xff] }
  0x94   : > { %v279_v38 = vld [vmem:[%s1316_s7 + $0x268] sm:$0xff]  ;;  %716 = vst [vmem:[%s1327_s17 + $0x248] sm:$0xff] %v569_v31  ;;  %v572_v40 = vmul.f32 %v425_v37, %v278_v35  ;;  %v280_v42 = vld [vmem:[%s1316_s7 + $0x270] sm:$0xff]  ;;  %v427_v43 = vld [vmem:[#allocation2 + $0x270] sm:$0xff] }
  0x95   : > { %717 = vst [vmem:[%s1327_s17 + $0x250] sm:$0xff] %v570_v32  ;;  %v573_v41 = vmul.f32 %v426_v39, %v279_v38  ;;  %v281_v44 = vld [vmem:[%s1316_s7 + $0x278] sm:$0xff]  ;;  %718 = vst [vmem:[%s1327_s17 + $0x258] sm:$0xff] %v571_v36  ;;  %v574_v45 = vmul.f32 %v427_v43, %v280_v42  ;;  %v428_v46 = vld [vmem:[#allocation2 + $0x278] sm:$0xff] }
  0x96   : > { %v282_v47 = vld [vmem:[%s1316_s7 + $0x280] sm:$0xff]  ;;  %v429_v48 = vld [vmem:[#allocation2 + $0x280] sm:$0xff]  ;;  %719 = vst [vmem:[%s1327_s17 + $0x260] sm:$0xff] %v572_v40  ;;  %v575_v49 = vmul.f32 %v428_v46, %v281_v44  ;;  %v430_v52 = vld [vmem:[#allocation2 + $0x288] sm:$0xff] }
  0x97   : > { %720 = vst [vmem:[%s1327_s17 + $0x268] sm:$0xff] %v573_v41  ;;  %v576_v50 = vmul.f32 %v429_v48, %v282_v47  ;;  %v283_v51 = vld [vmem:[%s1316_s7 + $0x288] sm:$0xff]  ;;  %v284_v53 = vld [vmem:[%s1316_s7 + $0x290] sm:$0xff]  ;;  %721 = vst [vmem:[%s1327_s17 + $0x270] sm:$0xff] %v574_v45 }
  0x98   : > { %v577_v54 = vmul.f32 %v430_v52, %v283_v51  ;;  %v431_v55 = vld [vmem:[#allocation2 + $0x290] sm:$0xff]  ;;  %v432_v57 = vld [vmem:[#allocation2 + $0x298] sm:$0xff]  ;;  %722 = vst [vmem:[%s1327_s17 + $0x278] sm:$0xff] %v575_v49  ;;  %v433_v61 = vld [vmem:[#allocation2 + $0x2a0] sm:$0xff] }
  0x99   : > { %v285_v56 = vld [vmem:[%s1316_s7 + $0x298] sm:$0xff]  ;;  %723 = vst [vmem:[%s1327_s17 + $0x280] sm:$0xff] %v576_v50  ;;  %v578_v58 = vmul.f32 %v431_v55, %v284_v53  ;;  %v286_v60 = vld [vmem:[%s1316_s7 + $0x2a0] sm:$0xff]  ;;  %v287_v62 = vld [vmem:[%s1316_s7 + $0x2a8] sm:$0xff] }
  0x9a   : > { %v579_v59 = vmul.f32 %v432_v57, %v285_v56  ;;  %724 = vst [vmem:[%s1327_s17 + $0x288] sm:$0xff] %v577_v54  ;;  %v580_v63 = vmul.f32 %v433_v61, %v286_v60  ;;  %v434_v0 = vld [vmem:[#allocation2 + $0x2a8] sm:$0xff]  ;;  %v435_v2 = vld [vmem:[#allocation2 + $0x2b0] sm:$0xff]  ;;  %v436_v6 = vld [vmem:[#allocation2 + $0x2b8] sm:$0xff] }
  0x9b   : > { %v288_v1 = vld [vmem:[%s1316_s7 + $0x2b0] sm:$0xff]  ;;  %725 = vst [vmem:[%s1327_s17 + $0x290] sm:$0xff] %v578_v58  ;;  %v581_v3 = vmul.f32 %v434_v0, %v287_v62  ;;  %v289_v5 = vld [vmem:[%s1316_s7 + $0x2b8] sm:$0xff]  ;;  %v290_v7 = vld [vmem:[%s1316_s7 + $0x2c0] sm:$0xff] }
  0x9c   : > { %726 = vst [vmem:[%s1327_s17 + $0x298] sm:$0xff] %v579_v59  ;;  %v582_v4 = vmul.f32 %v435_v2, %v288_v1  ;;  %727 = vst [vmem:[%s1327_s17 + $0x2a0] sm:$0xff] %v580_v63  ;;  %v583_v8 = vmul.f32 %v436_v6, %v289_v5  ;;  %v437_v9 = vld [vmem:[#allocation2 + $0x2c0] sm:$0xff]  ;;  %v438_v11 = vld [vmem:[#allocation2 + $0x2c8] sm:$0xff] }
  0x9d   : > { %v291_v10 = vld [vmem:[%s1316_s7 + $0x2c8] sm:$0xff]  ;;  %728 = vst [vmem:[%s1327_s17 + $0x2a8] sm:$0xff] %v581_v3  ;;  %v584_v12 = vmul.f32 %v437_v9, %v290_v7  ;;  %v292_v14 = vld [vmem:[%s1316_s7 + $0x2d0] sm:$0xff]  ;;  %v439_v15 = vld [vmem:[#allocation2 + $0x2d0] sm:$0xff] }
  0x9e   : > { %729 = vst [vmem:[%s1327_s17 + $0x2b0] sm:$0xff] %v582_v4  ;;  %v585_v13 = vmul.f32 %v438_v11, %v291_v10  ;;  %v293_v16 = vld [vmem:[%s1316_s7 + $0x2d8] sm:$0xff]  ;;  %730 = vst [vmem:[%s1327_s17 + $0x2b8] sm:$0xff] %v583_v8  ;;  %v586_v17 = vmul.f32 %v439_v15, %v292_v14  ;;  %v440_v18 = vld [vmem:[#allocation2 + $0x2d8] sm:$0xff] }
  0x9f   : > { %v294_v19 = vld [vmem:[%s1316_s7 + $0x2e0] sm:$0xff]  ;;  %v441_v20 = vld [vmem:[#allocation2 + $0x2e0] sm:$0xff]  ;;  %731 = vst [vmem:[%s1327_s17 + $0x2c0] sm:$0xff] %v584_v12  ;;  %v587_v21 = vmul.f32 %v440_v18, %v293_v16  ;;  %v442_v24 = vld [vmem:[#allocation2 + $0x2e8] sm:$0xff] }
  0xa0   : > { %732 = vst [vmem:[%s1327_s17 + $0x2c8] sm:$0xff] %v585_v13  ;;  %v588_v22 = vmul.f32 %v441_v20, %v294_v19  ;;  %v295_v23 = vld [vmem:[%s1316_s7 + $0x2e8] sm:$0xff]  ;;  %v296_v25 = vld [vmem:[%s1316_s7 + $0x2f0] sm:$0xff]  ;;  %733 = vst [vmem:[%s1327_s17 + $0x2d0] sm:$0xff] %v586_v17 }
  0xa1   : > { %v589_v26 = vmul.f32 %v442_v24, %v295_v23  ;;  %v443_v27 = vld [vmem:[#allocation2 + $0x2f0] sm:$0xff]  ;;  %v444_v29 = vld [vmem:[#allocation2 + $0x2f8] sm:$0xff]  ;;  %734 = vst [vmem:[%s1327_s17 + $0x2d8] sm:$0xff] %v587_v21  ;;  %v445_v33 = vld [vmem:[#allocation2 + $0x300] sm:$0xff] }
  0xa2   : > { %v297_v28 = vld [vmem:[%s1316_s7 + $0x2f8] sm:$0xff]  ;;  %735 = vst [vmem:[%s1327_s17 + $0x2e0] sm:$0xff] %v588_v22  ;;  %v590_v30 = vmul.f32 %v443_v27, %v296_v25  ;;  %v298_v32 = vld [vmem:[%s1316_s7 + $0x300] sm:$0xff]  ;;  %v299_v34 = vld [vmem:[%s1316_s7 + $0x308] sm:$0xff] }
  0xa3   : > { %v591_v31 = vmul.f32 %v444_v29, %v297_v28  ;;  %736 = vst [vmem:[%s1327_s17 + $0x2e8] sm:$0xff] %v589_v26  ;;  %v592_v35 = vmul.f32 %v445_v33, %v298_v32  ;;  %v446_v36 = vld [vmem:[#allocation2 + $0x308] sm:$0xff]  ;;  %v447_v38 = vld [vmem:[#allocation2 + $0x310] sm:$0xff]  ;;  %v448_v42 = vld [vmem:[#allocation2 + $0x318] sm:$0xff] }
  0xa4   : > { %v300_v37 = vld [vmem:[%s1316_s7 + $0x310] sm:$0xff]  ;;  %737 = vst [vmem:[%s1327_s17 + $0x2f0] sm:$0xff] %v590_v30  ;;  %v593_v39 = vmul.f32 %v446_v36, %v299_v34  ;;  %v301_v41 = vld [vmem:[%s1316_s7 + $0x318] sm:$0xff]  ;;  %v302_v43 = vld [vmem:[%s1316_s7 + $0x320] sm:$0xff] }
  0xa5   : > { %738 = vst [vmem:[%s1327_s17 + $0x2f8] sm:$0xff] %v591_v31  ;;  %v594_v40 = vmul.f32 %v447_v38, %v300_v37  ;;  %739 = vst [vmem:[%s1327_s17 + $0x300] sm:$0xff] %v592_v35  ;;  %v595_v44 = vmul.f32 %v448_v42, %v301_v41  ;;  %v449_v45 = vld [vmem:[#allocation2 + $0x320] sm:$0xff]  ;;  %v450_v47 = vld [vmem:[#allocation2 + $0x328] sm:$0xff] }
  0xa6   : > { %v303_v46 = vld [vmem:[%s1316_s7 + $0x328] sm:$0xff]  ;;  %740 = vst [vmem:[%s1327_s17 + $0x308] sm:$0xff] %v593_v39  ;;  %v596_v48 = vmul.f32 %v449_v45, %v302_v43  ;;  %v304_v50 = vld [vmem:[%s1316_s7 + $0x330] sm:$0xff]  ;;  %v451_v51 = vld [vmem:[#allocation2 + $0x330] sm:$0xff] }
  0xa7   : > { %741 = vst [vmem:[%s1327_s17 + $0x310] sm:$0xff] %v594_v40  ;;  %v597_v49 = vmul.f32 %v450_v47, %v303_v46  ;;  %v305_v52 = vld [vmem:[%s1316_s7 + $0x338] sm:$0xff]  ;;  %742 = vst [vmem:[%s1327_s17 + $0x318] sm:$0xff] %v595_v44  ;;  %v598_v53 = vmul.f32 %v451_v51, %v304_v50  ;;  %v452_v54 = vld [vmem:[#allocation2 + $0x338] sm:$0xff] }
  0xa8   : > { %v306_v55 = vld [vmem:[%s1316_s7 + $0x340] sm:$0xff]  ;;  %v453_v56 = vld [vmem:[#allocation2 + $0x340] sm:$0xff]  ;;  %743 = vst [vmem:[%s1327_s17 + $0x320] sm:$0xff] %v596_v48  ;;  %v599_v57 = vmul.f32 %v452_v54, %v305_v52  ;;  %v454_v60 = vld [vmem:[#allocation2 + $0x348] sm:$0xff] }
  0xa9   : > { %744 = vst [vmem:[%s1327_s17 + $0x328] sm:$0xff] %v597_v49  ;;  %v600_v58 = vmul.f32 %v453_v56, %v306_v55  ;;  %v307_v59 = vld [vmem:[%s1316_s7 + $0x348] sm:$0xff]  ;;  %v308_v61 = vld [vmem:[%s1316_s7 + $0x350] sm:$0xff]  ;;  %745 = vst [vmem:[%s1327_s17 + $0x330] sm:$0xff] %v598_v53 }
  0xaa   : > { %v601_v62 = vmul.f32 %v454_v60, %v307_v59  ;;  %v455_v63 = vld [vmem:[#allocation2 + $0x350] sm:$0xff]  ;;  %v456_v1 = vld [vmem:[#allocation2 + $0x358] sm:$0xff]  ;;  %746 = vst [vmem:[%s1327_s17 + $0x338] sm:$0xff] %v599_v57  ;;  %v457_v5 = vld [vmem:[#allocation2 + $0x360] sm:$0xff] }
  0xab   : > { %v309_v0 = vld [vmem:[%s1316_s7 + $0x358] sm:$0xff]  ;;  %747 = vst [vmem:[%s1327_s17 + $0x340] sm:$0xff] %v600_v58  ;;  %v602_v2 = vmul.f32 %v455_v63, %v308_v61  ;;  %v310_v4 = vld [vmem:[%s1316_s7 + $0x360] sm:$0xff]  ;;  %v311_v6 = vld [vmem:[%s1316_s7 + $0x368] sm:$0xff] }
  0xac   : > { %v603_v3 = vmul.f32 %v456_v1, %v309_v0  ;;  %748 = vst [vmem:[%s1327_s17 + $0x348] sm:$0xff] %v601_v62  ;;  %v604_v7 = vmul.f32 %v457_v5, %v310_v4  ;;  %v458_v8 = vld [vmem:[#allocation2 + $0x368] sm:$0xff]  ;;  %v459_v10 = vld [vmem:[#allocation2 + $0x370] sm:$0xff]  ;;  %v460_v14 = vld [vmem:[#allocation2 + $0x378] sm:$0xff] }
  0xad   : > { %v312_v9 = vld [vmem:[%s1316_s7 + $0x370] sm:$0xff]  ;;  %749 = vst [vmem:[%s1327_s17 + $0x350] sm:$0xff] %v602_v2  ;;  %v605_v11 = vmul.f32 %v458_v8, %v311_v6  ;;  %v313_v13 = vld [vmem:[%s1316_s7 + $0x378] sm:$0xff]  ;;  %v314_v15 = vld [vmem:[%s1316_s7 + $0x380] sm:$0xff] }
  0xae   : > { %750 = vst [vmem:[%s1327_s17 + $0x358] sm:$0xff] %v603_v3  ;;  %v606_v12 = vmul.f32 %v459_v10, %v312_v9  ;;  %751 = vst [vmem:[%s1327_s17 + $0x360] sm:$0xff] %v604_v7  ;;  %v607_v16 = vmul.f32 %v460_v14, %v313_v13  ;;  %v461_v17 = vld [vmem:[#allocation2 + $0x380] sm:$0xff]  ;;  %v462_v19 = vld [vmem:[#allocation2 + $0x388] sm:$0xff] }
  0xaf   : > { %v315_v18 = vld [vmem:[%s1316_s7 + $0x388] sm:$0xff]  ;;  %752 = vst [vmem:[%s1327_s17 + $0x368] sm:$0xff] %v605_v11  ;;  %v608_v20 = vmul.f32 %v461_v17, %v314_v15  ;;  %v316_v22 = vld [vmem:[%s1316_s7 + $0x390] sm:$0xff]  ;;  %v463_v23 = vld [vmem:[#allocation2 + $0x390] sm:$0xff] }
  0xb0   : > { %753 = vst [vmem:[%s1327_s17 + $0x370] sm:$0xff] %v606_v12  ;;  %v609_v21 = vmul.f32 %v462_v19, %v315_v18  ;;  %v317_v24 = vld [vmem:[%s1316_s7 + $0x398] sm:$0xff]  ;;  %754 = vst [vmem:[%s1327_s17 + $0x378] sm:$0xff] %v607_v16  ;;  %v610_v25 = vmul.f32 %v463_v23, %v316_v22  ;;  %v464_v26 = vld [vmem:[#allocation2 + $0x398] sm:$0xff] }
  0xb1   : > { %v318_v27 = vld [vmem:[%s1316_s7 + $0x3a0] sm:$0xff]  ;;  %v465_v28 = vld [vmem:[#allocation2 + $0x3a0] sm:$0xff]  ;;  %755 = vst [vmem:[%s1327_s17 + $0x380] sm:$0xff] %v608_v20  ;;  %v611_v29 = vmul.f32 %v464_v26, %v317_v24  ;;  %v466_v32 = vld [vmem:[#allocation2 + $0x3a8] sm:$0xff] }
  0xb2   : > { %756 = vst [vmem:[%s1327_s17 + $0x388] sm:$0xff] %v609_v21  ;;  %v612_v30 = vmul.f32 %v465_v28, %v318_v27  ;;  %v319_v31 = vld [vmem:[%s1316_s7 + $0x3a8] sm:$0xff]  ;;  %v320_v33 = vld [vmem:[%s1316_s7 + $0x3b0] sm:$0xff]  ;;  %757 = vst [vmem:[%s1327_s17 + $0x390] sm:$0xff] %v610_v25 }
  0xb3   : > { %v613_v34 = vmul.f32 %v466_v32, %v319_v31  ;;  %v467_v35 = vld [vmem:[#allocation2 + $0x3b0] sm:$0xff]  ;;  %v468_v37 = vld [vmem:[#allocation2 + $0x3b8] sm:$0xff]  ;;  %758 = vst [vmem:[%s1327_s17 + $0x398] sm:$0xff] %v611_v29  ;;  %v469_v41 = vld [vmem:[#allocation2 + $0x3c0] sm:$0xff] }
  0xb4   : > { %v321_v36 = vld [vmem:[%s1316_s7 + $0x3b8] sm:$0xff]  ;;  %759 = vst [vmem:[%s1327_s17 + $0x3a0] sm:$0xff] %v612_v30  ;;  %v614_v38 = vmul.f32 %v467_v35, %v320_v33  ;;  %v322_v40 = vld [vmem:[%s1316_s7 + $0x3c0] sm:$0xff]  ;;  %v323_v42 = vld [vmem:[%s1316_s7 + $0x3c8] sm:$0xff] }
  0xb5   : > { %v615_v39 = vmul.f32 %v468_v37, %v321_v36  ;;  %760 = vst [vmem:[%s1327_s17 + $0x3a8] sm:$0xff] %v613_v34  ;;  %v616_v43 = vmul.f32 %v469_v41, %v322_v40  ;;  %v470_v44 = vld [vmem:[#allocation2 + $0x3c8] sm:$0xff]  ;;  %v471_v46 = vld [vmem:[#allocation2 + $0x3d0] sm:$0xff]  ;;  %v472_v50 = vld [vmem:[#allocation2 + $0x3d8] sm:$0xff] }
  0xb6   : > { %v324_v45 = vld [vmem:[%s1316_s7 + $0x3d0] sm:$0xff]  ;;  %761 = vst [vmem:[%s1327_s17 + $0x3b0] sm:$0xff] %v614_v38  ;;  %v617_v47 = vmul.f32 %v470_v44, %v323_v42  ;;  %v325_v49 = vld [vmem:[%s1316_s7 + $0x3d8] sm:$0xff]  ;;  %v326_v51 = vld [vmem:[%s1316_s7 + $0x3e0] sm:$0xff] }
  0xb7   : > { %762 = vst [vmem:[%s1327_s17 + $0x3b8] sm:$0xff] %v615_v39  ;;  %v618_v48 = vmul.f32 %v471_v46, %v324_v45  ;;  %763 = vst [vmem:[%s1327_s17 + $0x3c0] sm:$0xff] %v616_v43  ;;  %v619_v52 = vmul.f32 %v472_v50, %v325_v49  ;;  %v473_v53 = vld [vmem:[#allocation2 + $0x3e0] sm:$0xff]  ;;  %v474_v55 = vld [vmem:[#allocation2 + $0x3e8] sm:$0xff] }
  0xb8   : > { %v327_v54 = vld [vmem:[%s1316_s7 + $0x3e8] sm:$0xff]  ;;  %764 = vst [vmem:[%s1327_s17 + $0x3c8] sm:$0xff] %v617_v47  ;;  %v620_v56 = vmul.f32 %v473_v53, %v326_v51  ;;  %v328_v58 = vld [vmem:[%s1316_s7 + $0x3f0] sm:$0xff]  ;;  %v475_v59 = vld [vmem:[#allocation2 + $0x3f0] sm:$0xff] }
  0xb9   : > { %765 = vst [vmem:[%s1327_s17 + $0x3d0] sm:$0xff] %v618_v48  ;;  %v621_v57 = vmul.f32 %v474_v55, %v327_v54  ;;  %v329_v60 = vld [vmem:[%s1316_s7 + $0x3f8] sm:$0xff]  ;;  %766 = vst [vmem:[%s1327_s17 + $0x3d8] sm:$0xff] %v619_v52  ;;  %v622_v61 = vmul.f32 %v475_v59, %v328_v58  ;;  %v476_v62 = vld [vmem:[#allocation2 + $0x3f8] sm:$0xff] }
  0xba   : > { %v330_v63 = vld [vmem:[%s1316_s7 + $0x400] sm:$0xff]  ;;  %v477_v0 = vld [vmem:[#allocation2 + $0x400] sm:$0xff]  ;;  %767 = vst [vmem:[%s1327_s17 + $0x3e0] sm:$0xff] %v620_v56  ;;  %v623_v1 = vmul.f32 %v476_v62, %v329_v60  ;;  %v478_v4 = vld [vmem:[#allocation2 + $0x408] sm:$0xff] }
  0xbb   : > { %768 = vst [vmem:[%s1327_s17 + $0x3e8] sm:$0xff] %v621_v57  ;;  %v624_v2 = vmul.f32 %v477_v0, %v330_v63  ;;  %v331_v3 = vld [vmem:[%s1316_s7 + $0x408] sm:$0xff]  ;;  %v332_v5 = vld [vmem:[%s1316_s7 + $0x410] sm:$0xff]  ;;  %769 = vst [vmem:[%s1327_s17 + $0x3f0] sm:$0xff] %v622_v61 }
  0xbc   : > { %v625_v6 = vmul.f32 %v478_v4, %v331_v3  ;;  %v479_v7 = vld [vmem:[#allocation2 + $0x410] sm:$0xff]  ;;  %v480_v9 = vld [vmem:[#allocation2 + $0x418] sm:$0xff]  ;;  %770 = vst [vmem:[%s1327_s17 + $0x3f8] sm:$0xff] %v623_v1  ;;  %v481_v13 = vld [vmem:[#allocation2 + $0x420] sm:$0xff] }
  0xbd   : > { %v333_v8 = vld [vmem:[%s1316_s7 + $0x418] sm:$0xff]  ;;  %771 = vst [vmem:[%s1327_s17 + $0x400] sm:$0xff] %v624_v2  ;;  %v626_v10 = vmul.f32 %v479_v7, %v332_v5  ;;  %v334_v12 = vld [vmem:[%s1316_s7 + $0x420] sm:$0xff]  ;;  %v335_v14 = vld [vmem:[%s1316_s7 + $0x428] sm:$0xff] }
  0xbe   : > { %v627_v11 = vmul.f32 %v480_v9, %v333_v8  ;;  %772 = vst [vmem:[%s1327_s17 + $0x408] sm:$0xff] %v625_v6  ;;  %v628_v15 = vmul.f32 %v481_v13, %v334_v12  ;;  %v482_v16 = vld [vmem:[#allocation2 + $0x428] sm:$0xff]  ;;  %v483_v18 = vld [vmem:[#allocation2 + $0x430] sm:$0xff]  ;;  %v484_v22 = vld [vmem:[#allocation2 + $0x438] sm:$0xff] }
  0xbf   : > { %v336_v17 = vld [vmem:[%s1316_s7 + $0x430] sm:$0xff]  ;;  %773 = vst [vmem:[%s1327_s17 + $0x410] sm:$0xff] %v626_v10  ;;  %v629_v19 = vmul.f32 %v482_v16, %v335_v14  ;;  %v337_v21 = vld [vmem:[%s1316_s7 + $0x438] sm:$0xff]  ;;  %v338_v23 = vld [vmem:[%s1316_s7 + $0x440] sm:$0xff] }
  0xc0   : > { %774 = vst [vmem:[%s1327_s17 + $0x418] sm:$0xff] %v627_v11  ;;  %v630_v20 = vmul.f32 %v483_v18, %v336_v17  ;;  %775 = vst [vmem:[%s1327_s17 + $0x420] sm:$0xff] %v628_v15  ;;  %v631_v24 = vmul.f32 %v484_v22, %v337_v21  ;;  %v485_v25 = vld [vmem:[#allocation2 + $0x440] sm:$0xff]  ;;  %v486_v27 = vld [vmem:[#allocation2 + $0x448] sm:$0xff] }
  0xc1   : > { %v339_v26 = vld [vmem:[%s1316_s7 + $0x448] sm:$0xff]  ;;  %776 = vst [vmem:[%s1327_s17 + $0x428] sm:$0xff] %v629_v19  ;;  %v632_v28 = vmul.f32 %v485_v25, %v338_v23  ;;  %v340_v30 = vld [vmem:[%s1316_s7 + $0x450] sm:$0xff]  ;;  %v487_v31 = vld [vmem:[#allocation2 + $0x450] sm:$0xff] }
  0xc2   : > { %777 = vst [vmem:[%s1327_s17 + $0x430] sm:$0xff] %v630_v20  ;;  %v633_v29 = vmul.f32 %v486_v27, %v339_v26  ;;  %v341_v32 = vld [vmem:[%s1316_s7 + $0x458] sm:$0xff]  ;;  %778 = vst [vmem:[%s1327_s17 + $0x438] sm:$0xff] %v631_v24  ;;  %v634_v33 = vmul.f32 %v487_v31, %v340_v30  ;;  %v488_v34 = vld [vmem:[#allocation2 + $0x458] sm:$0xff] }
  0xc3   : > { %v342_v35 = vld [vmem:[%s1316_s7 + $0x460] sm:$0xff]  ;;  %v489_v36 = vld [vmem:[#allocation2 + $0x460] sm:$0xff]  ;;  %779 = vst [vmem:[%s1327_s17 + $0x440] sm:$0xff] %v632_v28  ;;  %v635_v37 = vmul.f32 %v488_v34, %v341_v32  ;;  %v490_v40 = vld [vmem:[#allocation2 + $0x468] sm:$0xff] }
  0xc4   : > { %780 = vst [vmem:[%s1327_s17 + $0x448] sm:$0xff] %v633_v29  ;;  %v636_v38 = vmul.f32 %v489_v36, %v342_v35  ;;  %v343_v39 = vld [vmem:[%s1316_s7 + $0x468] sm:$0xff]  ;;  %v344_v41 = vld [vmem:[%s1316_s7 + $0x470] sm:$0xff]  ;;  %781 = vst [vmem:[%s1327_s17 + $0x450] sm:$0xff] %v634_v33 }
  0xc5   : > { %v637_v42 = vmul.f32 %v490_v40, %v343_v39  ;;  %v491_v43 = vld [vmem:[#allocation2 + $0x470] sm:$0xff]  ;;  %v492_v45 = vld [vmem:[#allocation2 + $0x478] sm:$0xff]  ;;  %782 = vst [vmem:[%s1327_s17 + $0x458] sm:$0xff] %v635_v37  ;;  %v493_v49 = vld [vmem:[#allocation2 + $0x480] sm:$0xff] }
  0xc6   : > { %v345_v44 = vld [vmem:[%s1316_s7 + $0x478] sm:$0xff]  ;;  %783 = vst [vmem:[%s1327_s17 + $0x460] sm:$0xff] %v636_v38  ;;  %v638_v46 = vmul.f32 %v491_v43, %v344_v41  ;;  %v346_v48 = vld [vmem:[%s1316_s7 + $0x480] sm:$0xff]  ;;  %v347_v50 = vld [vmem:[%s1316_s7 + $0x488] sm:$0xff] }
  0xc7   : > { %v639_v47 = vmul.f32 %v492_v45, %v345_v44  ;;  %784 = vst [vmem:[%s1327_s17 + $0x468] sm:$0xff] %v637_v42  ;;  %v640_v51 = vmul.f32 %v493_v49, %v346_v48  ;;  %v494_v52 = vld [vmem:[#allocation2 + $0x488] sm:$0xff]  ;;  %v495_v54 = vld [vmem:[#allocation2 + $0x490] sm:$0xff] }
  0xc8   : > { %v348_v53 = vld [vmem:[%s1316_s7 + $0x490] sm:$0xff]  ;;  %785 = vst [vmem:[%s1327_s17 + $0x470] sm:$0xff] %v638_v46  ;;  %v641_v55 = vmul.f32 %v494_v52, %v347_v50 }
  0xc9   : > { %786 = vst [vmem:[%s1327_s17 + $0x478] sm:$0xff] %v639_v47  ;;  %v642_v56 = vmul.f32 %v495_v54, %v348_v53  ;;  %787 = vst [vmem:[%s1327_s17 + $0x480] sm:$0xff] %v640_v51 }
  0xca   : > { %788 = vst [vmem:[%s1327_s17 + $0x488] sm:$0xff] %v641_v55 }
  0xcb   : > { %789 = vst [vmem:[%s1327_s17 + $0x490] sm:$0xff] %v642_v56 }
  0xcc   : > { %1064 = shalt.err (!%p1061_p5)
}
  0xcd   : > { %s1065_s24 = scalar_lea.hbm %s1620_s26, 18816  ;;  %s1069_s3 = scalar_lea.hbm %s1674_s2, 37632 }
  0xce   : > { %p1066_p10 = scmp.ne.s32.totalorder %s1620_s26, %s1065_s24  ;;  %p1070_p7 = scmp.lt.u32.totalorder %s1620_s26, %s1674_s2 }
  0xcf   : > { %p1071_p3 = scmp.lt.u32.totalorder %s1069_s3, %s1065_s24  ;;  %p1073_p4 = scmp.lt.u32.totalorder %s1065_s24, %s1620_s26 }
  0xd0   : > { %p1067_p1 = pnand %p1066_p10, %p1258_p13 }
  0xd1   : > { %p1072_p11 = por %p1071_p3, %p1070_p7 }
  0xd2   : > { %p1068_p2 = pneg %p1067_p1 }
  0xd3   : > { %p1074_p6 = por %p1073_p4, %p1072_p11 }
  0xd5   : > { %p1075_p8 = pnand %p1074_p6, %p1068_p2 }
  0xd7   : > { %1078 = shalt.err (!%p1075_p8)
}
  0xd8   : > { %926 = dma.vmem_to_hbm [thread:$0]  (%p1258_p13), %s1622_s21, 18816, %s1620_s26, %s791_s5  }
  0xd9 PF: > { %s819_s29 = sand.u32 1, %s1117_s9   ;;  %p1693_p9 = scmp.ne.s32.totalorder %s1682_s20, 0 }
  0xda   : > { %p1694_p12 = scmp.ge.s32.totalorder %s1137_s14, 2  ;;  %s820_s7 = scalar_lea.sflag [#allocation4], %s819_s29 }
  0xdc   : > { %p937_p0 = pnand %p1694_p12, %p1693_p9 }
  0xde   : > { %1112 = dma.done.wait (!%p937_p0), %s820_s7, 18816  }
  0xdf   : > { %1114 = vsyncadd (!%p937_p0), %s820_s7, 4294948480  ;;  %s19_s14 = sadd.s32 1, %s1137_s14   ;;  %s1695_s9 = smov %s1121_s10 }
  0xe0   : > { %p16_p5 = scmp.ge.s32.totalorder %s19_s14, 4   ;;  %s1696_s10 = smov %s1125_s11 }
  0xe1   : > { %s1697_s11 = smov %s1266_s28  ;;  %s1698_s12 = smov %s1133_s13 }
  0xe2   : > { %s1699_s13 = smov %s1701_s25  ;;  %18 = sbr.rel (!%p16_p5) target bundleno = 7 (0x7), region = 79 }
  0xe9   :  { %825 = vsyncpa [#allocation3], 1 }
  0xea   :  { %827 = vsyncpa [#allocation3 + $0x1], 1 }
  0xeb   :  { %828 = vsyncpa [#allocation6], 1 }
  0xec   :  { %830 = vsyncpa [#allocation6 + $0x1], 1 }
  0xed   :  { %831 = vsyncpa [#allocation4], 1 }
  0xee   :  { %833 = vsyncpa [#allocation4 + $0x1], 1 }

</bundles_post_ra>
